<compile_context>
chip_gen: v7x
topology: tpu7x:2x2x1
jax: 0.10.0
libtpu: 0.0.40
codegen_flags: <defaults>
</compile_context>

<pallas_src>
import functools

import jax
import jax.numpy as jnp
from jax.experimental import pallas as pl
from jax.experimental.pallas import tpu as pltpu

QMAX = 127.0
QMIN = -128.0
EPS = 1e-8


def _round_up(x, m):
    return (x + m - 1) // m * m


def _min_pad(size, candidates):
    # smallest padding waste; prefer the larger tile on ties (weight reuse)
    return min(candidates, key=lambda c: (_round_up(size, c) - size, -c))


# ------------------------------ kernels -------------------------------------


def _act_quant_kernel(x_ref, xq_ref, ascale_ref):
    """Per-token symmetric int8 fake quant (integer part only).

    x_ref:      (tm, K)  activation tile
    xq_ref:     (tm, K)  integer-valued quantized activation, bf16
    ascale_ref: (tm, 1)  per-token scale, f32
    """
    x = x_ref[...].astype(jnp.float32)
    amax = jnp.maximum(jnp.max(jnp.abs(x), axis=-1, keepdims=True), EPS)  # (tm,1)
    inv = QMAX / amax                       # tiny per-row divide, not (tm,K)-wide
    xq_ref[...] = jnp.clip(jnp.round(x * inv), QMIN, QMAX).astype(jnp.bfloat16)
    ascale_ref[...] = amax * (1.0 / QMAX)


def _fq_matmul_kernel(xq_ref, wqt_ref, ascale_ref, sb_ref, o_ref, acc_ref,
                      *, has_bias):
    """One (tm, tn) output tile, accumulated over the K grid axis.

    xq_ref:     (tm, tk)  integer-valued bf16 activations
    wqt_ref:    (tk, tn)  integer-valued bf16 weights, pre-transposed (K, N)
    ascale_ref: (tm, 1)   per-token activation scale, f32
    sb_ref:     (R, tn)   row 0 = per-channel weight scale, row 1 = bias (if any)
    o_ref:      (tm, tn)  output tile
    acc_ref:    (tm, tn)  f32 accumulator scratch
    """
    k = pl.program_id(2)

    @pl.when(k == 0)
    def _():
        acc_ref[...] = jnp.zeros_like(acc_ref)

    acc_ref[...] += jnp.dot(xq_ref[...], wqt_ref[...],
                            preferred_element_type=jnp.float32)

    @pl.when(k == pl.num_programs(2) - 1)
    def _():
        # combined (activation x weight) scale as one outer product, one store
        out = acc_ref[...] * (ascale_ref[...] * sb_ref[0:1, :])
        if has_bias:
            out = out + sb_ref[1:2, :]
        o_ref[...] = out.astype(o_ref.dtype)


# ------------------------------ wrappers ------------------------------------


def prepare_fake_quant_weight(weight):
    """One-time per-output-channel weight fake quant (== cached tmp_weight).

    Returns (wq_t, w_scale): wq_t (K, N) bf16 integer-valued, w_scale (N,) f32.
    Cache and reuse across calls to avoid re-reading/re-quantizing the weight.
    """
    wf = weight.astype(jnp.float32)                      # (N, K)
    w_amax = jnp.max(jnp.abs(wf), axis=1)                # (N,)
    w_scale = jnp.maximum(w_amax, EPS) / QMAX            # (N,)
    wq = jnp.clip(jnp.round(wf / w_scale[:, None]), QMIN, QMAX)
    return wq.astype(jnp.bfloat16).T, w_scale            # (K, N), (N,)


def fake_quant_linear(x, weight, bias=None, *, prepared=None,
                      tm=None, tn=None, tk=None):
    """x: (..., K); weight: (N, K); bias: (N,) or None.

    Pass `prepared = prepare_fake_quant_weight(weight)` to reuse the quantized
    weight across calls (mirrors the module's cached tmp_weight).
    """
    orig_shape = x.shape
    K = orig_shape[-1]
    N = weight.shape[0]
    x2 = x.reshape(-1, K)
    M = x2.shape[0]

    if prepared is None:
        prepared = prepare_fake_quant_weight(weight)
    wq_t, w_scale = prepared

    # ---- tile selection: minimize padding waste, keep stores lane-dense -----
    if tm is None:
        tm = max(16, _round_up(M, 16)) if M <= 512 else \
            _min_pad(M, (512, 448, 384, 320, 256, 192, 128))
    if tn is None:
        tn = _round_up(N, 128) if N <= 512 else _min_pad(N, (512, 384, 256))
    if tk is None:
        tk = K if K <= 2048 else _min_pad(K, (2048, 1536, 1024, 512))

    Mp, Np, Kp = _round_up(M, tm), _round_up(N, tn), _round_up(K, tk)

    # ---- pad operands (zero padding is exact for the quantized matmul) ------
    if Mp != M or Kp != K:
        x2 = jnp.pad(x2, ((0, Mp - M), (0, Kp - K)))
    if Kp != K or Np != N:
        wq_t = jnp.pad(wq_t, ((0, Kp - K), (0, Np - N)))
    rows = [jnp.pad(w_scale.astype(jnp.float32), (0, Np - N))]
    if bias is not None:
        rows.append(jnp.pad(bias.astype(jnp.float32), (0, Np - N)))
    sb = jnp.stack(rows, axis=0)                          # (1 or 2, Np) f32

    # ---- pre-pass: per-token activation quant (once per row, not per N tile)
    tm_pre = tm
    x_bytes = x2.dtype.itemsize
    while (2 * tm_pre * Kp * (x_bytes + 2) > 24 * 1024 * 1024
           and tm_pre % 32 == 0 and Mp % (tm_pre // 2) == 0):
        tm_pre //= 2

    xq, a_scale = pl.pallas_call(
        _act_quant_kernel,
        out_shape=(jax.ShapeDtypeStruct((Mp, Kp), jnp.bfloat16),
                   jax.ShapeDtypeStruct((Mp, 1), jnp.float32)),
        grid_spec=pltpu.PrefetchScalarGridSpec(
            num_scalar_prefetch=0,
            grid=(Mp // tm_pre,),
            in_specs=[pl.BlockSpec((tm_pre, Kp), lambda i: (i, 0))],
            out_specs=[pl.BlockSpec((tm_pre, Kp), lambda i: (i, 0)),
                       pl.BlockSpec((tm_pre, 1), lambda i: (i, 0))],
        ),
        compiler_params=pltpu.CompilerParams(
            dimension_semantics=("parallel",)),
    )(x2)

    # ---- main fused matmul + rescale kernel ----------------------------------
    n_i, n_j, n_k = Mp // tm, Np // tn, Kp // tk
    out_itemsize = jnp.dtype(x.dtype).itemsize

    vmem_est = (2 * tm * tk * 2          # xq, double-buffered bf16
                + 2 * tk * tn * 2        # weight, double-buffered bf16
                + 2 * tm * 4             # a_scale
                + 2 * sb.shape[0] * tn * 4
                + 2 * tm * tn * out_itemsize
                + tm * tn * 4)           # f32 accumulator scratch
    vmem_limit = min(48 * 1024 * 1024, max(24 * 1024 * 1024, int(2 * vmem_est)))

    cost = pl.CostEstimate(
        flops=2 * M * N * K,
        transcendentals=0,
        bytes_accessed=int(Mp * Kp * 2 + n_i * Kp * Np * 2
                           + Mp * Np * out_itemsize))

    out = pl.pallas_call(
        functools.partial(_fq_matmul_kernel, has_bias=bias is not None),
        out_shape=jax.ShapeDtypeStruct((Mp, Np), x.dtype),
        grid_spec=pltpu.PrefetchScalarGridSpec(
            num_scalar_prefetch=0,
            grid=(n_i, n_j, n_k),
            in_specs=[
                pl.BlockSpec((tm, tk), lambda i, j, k: (i, k)),          # xq
                pl.BlockSpec((tk, tn), lambda i, j, k: (k, j)),          # W^T (K,N)
                pl.BlockSpec((tm, 1), lambda i, j, k: (i, 0)),           # a_scale
                pl.BlockSpec((sb.shape[0], tn), lambda i, j, k: (0, j)), # scale+bias
            ],
            out_specs=pl.BlockSpec((tm, tn), lambda i, j, k: (i, j)),
            scratch_shapes=[pltpu.VMEM((tm, tn), jnp.float32)],
        ),
        compiler_params=pltpu.CompilerParams(
            dimension_semantics=("parallel", "parallel", "arbitrary"),
            vmem_limit_bytes=vmem_limit),
        cost_estimate=cost,
    )(xq, wq_t, a_scale, sb)

    out = out[:M, :N]
    return out.reshape(*orig_shape[:-1], N)


# ------------------------------ reference -----------------------------------


def _reference(x, weight, bias):
    """Pure-JAX reference matching FakeQuantLinear forward semantics."""
    xf = x.astype(jnp.float32)
    a_scale = jnp.maximum(jnp.max(jnp.abs(xf), axis=-1, keepdims=True), EPS) / QMAX
    xq = jnp.clip(jnp.round(xf / a_scale), QMIN, QMAX) * a_scale
    wf = weight.astype(jnp.float32)
    w_scale = jnp.maximum(jnp.max(jnp.abs(wf), axis=-1, keepdims=True), EPS) / QMAX
    wq = jnp.clip(jnp.round(wf / w_scale), QMIN, QMAX) * w_scale
    y = xq @ wq.T
    if bias is not None:
        y = y + bias.astype(jnp.float32)
    return y.astype(x.dtype)


if __name__ == "__main__":
    key = jax.random.PRNGKey(0)
    k_x, k_w, k_b, k_x2, k_w2, k_x3, k_w3, k_b3 = jax.random.split(key, 8)

    # Test 1: small shape with bias (batch=2, seq=8, in=32, out=64).
    batch, seq, in_features, out_features = 2, 8, 32, 64
    x = jax.random.normal(k_x, (batch, seq, in_features), dtype=jnp.float32)
    weight = jax.random.normal(k_w, (out_features, in_features),
                               dtype=jnp.float32) * 0.05
    bias = jax.random.normal(k_b, (out_features,), dtype=jnp.float32) * 0.01

    y = fake_quant_linear(x, weight, bias)
    jax.block_until_ready(y)
    y_ref = _reference(x, weight, bias)
    assert y.shape == (batch, seq, out_features)
    assert jnp.allclose(y, y_ref, atol=1e-4, rtol=1e-4), "mismatch vs reference (1)"

    # Test 2: exercises N tiling (tn=256) and the no-bias path.
    M2, K2, N2 = 48, 128, 256
    x2 = jax.random.normal(k_x2, (1, M2, K2), dtype=jnp.float32)
    w2 = jax.random.normal(k_w2, (N2, K2), dtype=jnp.float32) * 0.05
    y2 = fake_quant_linear(x2, w2, None)
    jax.block_until_ready(y2)
    y2_ref = _reference(x2, w2, None)
    assert y2.shape == (1, M2, N2)
    assert jnp.allclose(y2, y2_ref, atol=1e-4, rtol=1e-4), "mismatch vs reference (2)"

    # Test 3: K-axis accumulation (tk=128 -> 2 k-steps) + cached prepared weight.
    M3, K3, N3 = 32, 256, 128
    x3 = jax.random.normal(k_x3, (4, 8, K3), dtype=jnp.float32)
    w3 = jax.random.normal(k_w3, (N3, K3), dtype=jnp.float32) * 0.05
    b3 = jax.random.normal(k_b3, (N3,), dtype=jnp.float32) * 0.01
    prepared3 = prepare_fake_quant_weight(w3)       # cached "tmp_weight"
    y3 = fake_quant_linear(x3, w3, b3, prepared=prepared3, tk=128)
    jax.block_until_ready(y3)
    y3_ref = _reference(x3, w3, b3)
    assert y3.shape == (4, 8, N3)
    assert jnp.allclose(y3, y3_ref, atol=1e-4, rtol=1e-4), "mismatch vs reference (3)"

    print("KERNEL_OK")
</pallas_src>

<mosaic_0001>
module attributes {stable_mosaic.version = 11 : i64} {
  func.func @_act_quant_kernel(%arg0: i32, %arg1: memref<16x32xf32, #tpu.memory_space<vmem>>, %arg2: memref<16x32xbf16, #tpu.memory_space<vmem>>, %arg3: memref<16x1xf32, #tpu.memory_space<vmem>>) attributes {dimension_semantics = [#tpu.dimension_semantics<parallel>], iteration_bounds = array<i64: 1>, scalar_prefetch = 0 : i64, scratch_operands = 0 : i64, tpu.core_type = #tpu.core_type<tc>, window_params = [{transform_indices = @transform_0, window_bounds = array<i64: 16, 32>}, {transform_indices = @transform_1, window_bounds = array<i64: 16, 32>}, {transform_indices = @transform_2, window_bounds = array<i64: 16, 1>}]} {
    %c0 = arith.constant 0 : index
    %c0_0 = arith.constant 0 : index
    %0 = vector.load %arg1[%c0, %c0_0] : memref<16x32xf32, #tpu.memory_space<vmem>>, vector<16x32xf32>
    %1 = math.absf %0 : vector<16x32xf32>
    %cst = arith.constant dense<0xFF800000> : vector<16xf32>
    %2 = vector.multi_reduction <maximumf>, %1, %cst [1] : vector<16x32xf32> to vector<16xf32>
    %3 = vector.shape_cast %2 : vector<16xf32> to vector<16x1xf32>
    %cst_1 = arith.constant 9.99999993E-9 : f32
    %4 = vector.broadcast %cst_1 : f32 to vector<16x1xf32>
    %5 = arith.maximumf %3, %4 : vector<16x1xf32>
    %cst_2 = arith.constant 1.270000e+02 : f32
    %6 = vector.broadcast %cst_2 : f32 to vector<16x1xf32>
    %7 = arith.divf %6, %5 : vector<16x1xf32>
    %8 = vector.broadcast %7 : vector<16x1xf32> to vector<16x32xf32>
    %9 = arith.mulf %0, %8 : vector<16x32xf32>
    %10 = math.roundeven %9 : vector<16x32xf32>
    %cst_3 = arith.constant -1.280000e+02 : f32
    %cst_4 = arith.constant 1.270000e+02 : f32
    %11 = vector.broadcast %cst_3 : f32 to vector<16x32xf32>
    %12 = arith.maximumf %11, %10 : vector<16x32xf32>
    %13 = vector.broadcast %cst_4 : f32 to vector<16x32xf32>
    %14 = arith.minimumf %13, %12 : vector<16x32xf32>
    %15 = arith.truncf %14 : vector<16x32xf32> to vector<16x32xbf16>
    %c0_5 = arith.constant 0 : index
    %c0_6 = arith.constant 0 : index
    %16 = vector.load %arg2[%c0_5, %c0_6] : memref<16x32xbf16, #tpu.memory_space<vmem>>, vector<16x32xbf16>
    tpu.vector_store %arg2[%c0_5, %c0_6], %15 {strides = array<i32>} : memref<16x32xbf16, #tpu.memory_space<vmem>>, vector<16x32xbf16>,
    %cst_7 = arith.constant 0.00787401571 : f32
    %17 = vector.broadcast %cst_7 : f32 to vector<16x1xf32>
    %18 = arith.mulf %5, %17 : vector<16x1xf32>
    %c0_8 = arith.constant 0 : index
    %c0_9 = arith.constant 0 : index
    %19 = vector.load %arg3[%c0_8, %c0_9] : memref<16x1xf32, #tpu.memory_space<vmem>>, vector<16x1xf32>
    tpu.vector_store %arg3[%c0_8, %c0_9], %18 {strides = array<i32>} : memref<16x1xf32, #tpu.memory_space<vmem>>, vector<16x1xf32>,
    return
  }
  func.func @transform_0(%arg0: i32) -> (i32, i32) {
    %c0_i32 = arith.constant 0 : i32
    %c0_i32_0 = arith.constant 0 : i32
    return %arg0, %c0_i32 : i32, i32
  }
  func.func @transform_1(%arg0: i32) -> (i32, i32) {
    %c0_i32 = arith.constant 0 : i32
    %c0_i32_0 = arith.constant 0 : i32
    return %arg0, %c0_i32 : i32, i32
  }
  func.func @transform_2(%arg0: i32) -> (i32, i32) {
    %c0_i32 = arith.constant 0 : i32
    %c0_i32_0 = arith.constant 0 : i32
    return %arg0, %c0_i32 : i32, i32
  }
}

</mosaic_0001>

<bundles_post_ra>
// kernel: tpu_custom_call.1
= control target key start
LH: loop header
LB: loop body
LE: loop exit
PB: predicated region body
PF: predicated region fallthrough
CT: control target
= control target key end

     0   :  { %8 = vsyncpa [#allocation3], 0  ;;  %s202_s0 = inlined_call_operand.hbm [shape: f32[16,32], index: 0, kind: input, shape index: {}]   ;;  %s203_s1 = inlined_call_operand.hbm [shape: bf16[16,32], index: 1, kind: output, shape index: {0}]   ;;  %s204_s2 = inlined_call_operand.vmem [shape: f32[16,1], index: 2, kind: output, shape index: {1}]  }
   0x1   :  { %9 = vsyncpa [#allocation4], 0  ;;  %s151_s9 = smov [#allocation2]   ;;  %s103_s13 = scalar_lea.hbm %s202_s0, 256 }
   0x2   :  { %s15_s10 = sshll.u32 %s151_s9, 4  ;;  %p104_p0 = scmp.ne.s32.totalorder %s202_s0, %s103_s13  ;;  %s16_s10 = int_to_ptr.vmem [resolvable:$true] %s15_s10 }
   0x3   :  { %p107_p1 = scmp.lt.u32.totalorder %s103_s13, %s202_s0 }
   0x5   :  { %p109_p2 = pnand %p107_p1, %p104_p0 }
   0x7   :  { %112 = shalt.err (!%p109_p2)
}
   0x8   :  { %s113_s18 = scalar_lea.vmem %s16_s10, 256  ;;  %p118_p4 = scmp.lt.s32.totalorder %s16_s10, %s16_s10 }
   0x9   :  { %p114_p3 = scmp.ne.s32.totalorder %s16_s10, %s113_s18  ;;  %p119_p5 = scmp.lt.s32.totalorder %s113_s18, %s113_s18 }
   0xb   :  { %p120_p6 = por %p119_p5, %p118_p4 }
   0xd   :  { %p121_p7 = pnand %p120_p6, %p114_p3 }
   0xf   :  { %124 = shalt.err (!%p121_p7)
}
  0x10   :  { %s152_s19 = smov 128   ;;  %s153_s20 = smov 8  }
  0x11   :  { %21 = dma.hbm_to_vmem [thread:$0]  %s202_s0, 256, %s16_s10, [#allocation3], %s152_s19, %s152_s19, %s153_s20  }
  0x12   :  { %147 = dma.done.wait [#allocation3], 256  }
  0x13   :  { %148 = vsyncadd [#allocation3], 4294967040  ;;  %v25_v0 = vld [vmem:[#allocation2] sm:$0xff]  ;;  %vm29_vm0 = vcmask 261120   ;;  %v26_v1 = vld [vmem:[#allocation2 + $0x8] sm:$0xff]  ;;  %vm63_vm1 = vcmask 7168  }
  0x14   :  { %v27_v2 = vand.u32 2147483647, %v25_v0  ;;  %v28_v3 = vand.u32 2147483647, %v26_v1  ;;  %vm58_vm2 = vcmask 257024   ;;  %s154_s26 = smov [#allocation5]  }
  0x15   :  { %s71_s27 = sshll.u32 %s154_s26, 4  ;;  %s72_s27 = int_to_ptr.vmem [resolvable:$true] %s71_s27 }
  0x16   :  { %v30_v4 = vsel %vm29_vm0, %v27_v2, -inf  ;;  %v33_v5 = vsel %vm29_vm0, %v28_v3, -inf  ;;  %p130_p9 = scmp.lt.s32.totalorder %s72_s27, %s72_s27 }
  0x17   :  { %31 = vmax.xlane.f32.xlu0 %v30_v4 }
  0x1b   :  { %34 = vmax.xlane.f32.xlu0 %v33_v5 }
  0xa4   :  { %v32_v6 = vpop.xlane.xlu0 %31 }
  0xa5   :  { %v36_v7 = vmax.f32 %v32_v6, 1e-08 }
  0xa7   :  { %99 = vrcp.f32 %v36_v7  ;;  %v61_v8 = vmul.f32 0.007874016, %v36_v7 }
  0xa8   :  { %v35_v9 = vpop.xlane.xlu0 %34 }
  0xa9   :  { %64 = vst.msk [vmem:[%s204_s2] sm:$0xff] %vm63_vm1, %v61_v8  ;;  %v37_v10 = vmax.f32 %v35_v9, 1e-08 }
  0xab   :  { %101 = vrcp.f32 %v37_v10  ;;  %v62_v11 = vmul.f32 0.007874016, %v37_v10 }
  0xad   :  { %65 = vst.msk [vmem:[%s204_s2 + $0x8] sm:$0xff] %vm63_vm1, %v62_v11  ;;  %s125_s2 = scalar_lea.vmem %s72_s27, 128 }
  0xae   :  { %p126_p8 = scmp.ne.s32.totalorder %s72_s27, %s125_s2  ;;  %p131_p10 = scmp.lt.s32.totalorder %s125_s2, %s125_s2 }
  0xb0   :  { %p132_p11 = por %p131_p10, %p130_p9 }
  0xb1   :  { %v100_v12 = vpop.eup %99 }
  0xb2   :  { %v39_v13 = vmul.f32 127.0, %v100_v12  ;;  %p133_p12 = pnand %p132_p11, %p126_p8 }
  0xb4   :  { %v42_v14 = vmul.f32 %v39_v13, %v25_v0 }
  0xb5   :  { %v102_v15 = vpop.eup %101 }
  0xb6   :  { %v91_v16 = vround.rtne.f32 %v42_v14  ;;  %v41_v17 = vmul.f32 127.0, %v102_v15 }
  0xb8   :  { %v46_v18 = vmax.f32 %v91_v16, -128.0  ;;  %v43_v19 = vmul.f32 %v41_v17, %v26_v1 }
  0xba   :  { %v48_v20 = vmin.f32 %v46_v18, 127.0  ;;  %v92_v21 = vround.rtne.f32 %v43_v19 }
  0xbc   :  { %v89_v22 = vpack.c.bf16 %v48_v20, %v48_v20  ;;  %v47_v23 = vmax.f32 %v92_v21, -128.0 }
  0xbe   :  { %v49_v24 = vmin.f32 %v47_v23, 127.0  ;;  %59 = vst.msk [vmem:[#allocation5] sm:$0xf] %vm58_vm2, %v89_v22 }
  0xc0   :  { %v90_v25 = vpack.c.bf16 %v49_v24, %v49_v24 }
  0xc2   :  { %60 = vst.msk [vmem:[#allocation5 + $0x4] sm:$0xf] %vm58_vm2, %v90_v25 }
  0xc3   :  { %136 = shalt.err (!%p133_p12)
}
  0xc4   :  { %s137_s30 = scalar_lea.hbm %s203_s1, 128 }
  0xc5   :  { %p138_p13 = scmp.ne.s32.totalorder %s203_s1, %s137_s30  ;;  %p141_p0 = scmp.lt.u32.totalorder %s137_s30, %s203_s1 }
  0xc7   :  { %p143_p1 = pnand %p141_p0, %p138_p13 }
  0xc9   :  { %146 = shalt.err (!%p143_p1)
}
  0xca   :  { %s155_s7 = smov 64   ;;  %s156_s8 = smov 4  }
  0xcb   :  { %77 = dma.vmem_to_hbm [thread:$0]  %s72_s27, 128, %s203_s1, [#allocation4], %s155_s7, %s155_s7, %s156_s8  }
  0xcc   :  { %149 = dma.done.wait [#allocation4], 128  }
  0xcd   :  { %150 = vsyncadd [#allocation4], 4294967168 }
  0xce   :  { %85 = vsyncpa [#allocation3], 1 }
  0xcf   :  { %86 = vsyncpa [#allocation4], 1 }

</bundles_post_ra>
